<compile_context>
chip_gen: v7x
topology: tpu7x:2x2x1
jax: 0.10.0
libtpu: 0.0.40
codegen_flags: <defaults>
</compile_context>

<pallas_src>
import jax
import jax.numpy as jnp
from jax.experimental import pallas as pl
from jax.experimental.pallas import tpu as pltpu

EMBEDDING_DIM = 50
HIDDEN_DIM = 100
FEATURE_HIDDEN_DIM = 100
TB_MAX = 2048          # batch tile (rows); per-step VMEM footprint is only a few MB
OUT_LANES = 128        # lane-dense padded class dimension


def _round_up(x, m):
    return ((x + m - 1) // m) * m


def _cdiv(a, b):
    return -(-a // b)


def nernn_kernel(words_ref, feat_ref,
                 lut_ref, b_fce_ref,
                 w_feat_ref, b_feat_ref,
                 w_fc3e_ref, w_ff_ref, b_tot_ref,
                 out_ref):
    tb = words_ref.shape[0]
    three_vocab = lut_ref.shape[0]

    # ---- embedding + fce gather realized as one multi-hot MXU matmul ----
    # word ids arrive pre-offset into the stacked-LUT row space, so the three
    # one-hot ranges are disjoint and a plain sum builds the multi-hot.
    ids = words_ref[...]                                              # (TB, 3) i32
    col = jax.lax.broadcasted_iota(jnp.int32, (tb, three_vocab), 1)   # (TB, 3V)
    onehot = ((col == ids[:, 0:1]).astype(jnp.bfloat16)
              + (col == ids[:, 1:2]).astype(jnp.bfloat16)
              + (col == ids[:, 2:3]).astype(jnp.bfloat16))            # (TB, 3V) bf16

    # x0 = relu(fce(embeddings)) — the matmul part lives in the LUT.
    x0 = jnp.maximum(
        jnp.dot(onehot, lut_ref[...], preferred_element_type=jnp.float32)
        + b_fce_ref[...], 0.0)                                        # (TB, 50) f32

    # cat(x1, x2, x3) via a single block-diagonal shared-fcf matmul; keep the
    # (TB, 300) intermediate in bf16 to halve its VMEM traffic.
    h = jnp.maximum(
        jnp.dot(feat_ref[...], w_feat_ref[...],
                preferred_element_type=jnp.float32) + b_feat_ref[...],
        0.0).astype(jnp.bfloat16)                                     # (TB, 300) bf16

    # logits = x0 @ W_e + h @ (w_fh @ W_f) + (b_fh @ W_f + b_fc3)
    # (fcf_hidden folded into fc3; padded to 128 lanes, pad bias = -1e30).
    logits = (jnp.dot(x0.astype(jnp.bfloat16), w_fc3e_ref[...],
                      preferred_element_type=jnp.float32)
              + jnp.dot(h, w_ff_ref[...],
                        preferred_element_type=jnp.float32)
              + b_tot_ref[...])                                       # (TB, 128) f32

    # log_softmax over the (padded) class dimension, f32 math, bf16 store.
    m = jnp.max(logits, axis=1, keepdims=True)
    z = logits - m
    lse = jnp.log(jnp.sum(jnp.exp(z), axis=1, keepdims=True))
    out_ref[...] = (z - lse).astype(out_ref.dtype)


def init_params(key, vocab_size, num_features, output_size):
    keys = jax.random.split(key, 9)

    def linear(kw, kb, fan_in, fan_out):
        bound = 1.0 / float(fan_in) ** 0.5
        w = jax.random.uniform(kw, (fan_in, fan_out), jnp.float32, -bound, bound)
        b = jax.random.uniform(kb, (1, fan_out), jnp.float32, -bound, bound)
        return w, b

    emb = jax.random.normal(keys[0], (vocab_size, EMBEDDING_DIM), jnp.float32)
    emb = emb.at[0].set(0.0)  # padding_idx=0

    w_fcf, b_fcf = linear(keys[1], keys[2], num_features, FEATURE_HIDDEN_DIM)
    w_fce, b_fce = linear(keys[3], keys[4], EMBEDDING_DIM * 3, HIDDEN_DIM // 2)
    w_fh, b_fh = linear(keys[5], keys[6], FEATURE_HIDDEN_DIM * 3, HIDDEN_DIM // 2)
    w_fc3, b_fc3 = linear(keys[7], keys[8], HIDDEN_DIM, output_size)

    return dict(embeddings=emb, num_features=num_features,
                w_fcf=w_fcf, b_fcf=b_fcf,
                w_fce=w_fce, b_fce=b_fce,
                w_fh=w_fh, b_fh=b_fh,
                w_fc3=w_fc3, b_fc3=b_fc3)


def nernn_forward(words, features, params):
    B = words.shape[0]
    nf = params["num_features"]
    vocab = params["embeddings"].shape[0]
    out_size = params["w_fc3"].shape[1]
    half = HIDDEN_DIM // 2
    fh = FEATURE_HIDDEN_DIM
    out_pad = _round_up(max(out_size, OUT_LANES), 128)
    bf16 = jnp.bfloat16

    # ---- embedding + fce folded into a stacked LUT (inference form) ----
    emb = params["embeddings"]
    w_fce = params["w_fce"]
    lut = jnp.concatenate(
        [emb @ w_fce[k * EMBEDDING_DIM:(k + 1) * EMBEDDING_DIM, :]
         for k in range(3)], axis=0).astype(bf16)              # (3*vocab, half)

    # word ids pre-offset into the stacked-LUT row space; gather happens in-kernel.
    words_off = (words.astype(jnp.int32)
                 + jnp.arange(3, dtype=jnp.int32)[None, :] * vocab)   # (B, 3)

    # features: int -> bf16 directly (binary features are exact in bf16).
    feat = features.reshape(B, -1).astype(bf16)                # (B, 3*nf)

    # ---- block-diagonal shared-fcf weight: one matmul == cat(x1,x2,x3) ----
    w_fcf = params["w_fcf"]
    w_bd = jnp.zeros((3 * nf, 3 * fh), jnp.float32)
    for k in range(3):
        w_bd = w_bd.at[k * nf:(k + 1) * nf, k * fh:(k + 1) * fh].set(w_fcf)
    w_bd = w_bd.astype(bf16)
    b_bd = jnp.tile(params["b_fcf"], (1, 3))                   # (1, 3*fh) f32

    # ---- lane-dense padded classifier + algebraic fold of fcf_hidden ----
    w_fc3_pad = jnp.zeros((HIDDEN_DIM, out_pad), jnp.float32)
    w_fc3_pad = w_fc3_pad.at[:, :out_size].set(params["w_fc3"])
    b_fc3_pad = jnp.full((1, out_pad), -1e30, jnp.float32)
    b_fc3_pad = b_fc3_pad.at[:, :out_size].set(params["b_fc3"])
    w_fc3e = w_fc3_pad[:half, :].astype(bf16)                  # (half, out_pad)
    # No relu between fcf_hidden and fc3 => fold in f32, single bf16 cast.
    w_ff = (params["w_fh"] @ w_fc3_pad[half:, :]).astype(bf16)       # (3*fh, out_pad)
    b_tot = params["b_fh"] @ w_fc3_pad[half:, :] + b_fc3_pad         # (1, out_pad) f32

    # ---- batch tiling: even grid length (>=2) so both v7x TCs get work ----
    n_steps = max(2, 2 * _cdiv(B, 2 * TB_MAX))
    TB = _round_up(_cdiv(B, n_steps), 8)
    B_pad = n_steps * TB
    if B_pad != B:
        words_off = jnp.pad(words_off, ((0, B_pad - B), (0, 0)))
        feat = jnp.pad(feat, ((0, B_pad - B), (0, 0)))

    cost = pl.CostEstimate(
        flops=2 * B_pad * (3 * vocab * half + 3 * nf * 3 * fh
                           + 3 * fh * out_pad + half * out_pad),
        transcendentals=B_pad * out_pad,
        bytes_accessed=(B_pad * 3 * 4                 # word ids
                        + B_pad * 3 * nf * 2          # features (bf16)
                        + B_pad * out_pad * 2         # output (bf16)
                        + 3 * vocab * half * 2        # LUT
                        + 3 * nf * 3 * fh * 2         # block-diag fcf
                        + 3 * fh * out_pad * 2        # folded w_ff
                        + half * out_pad * 2          # w_fc3e
                        + (half + 3 * fh + out_pad) * 4),  # biases
    )

    def tiled(shape):
        return pl.BlockSpec(shape, lambda i: (i, 0))

    def resident(shape):
        return pl.BlockSpec(shape, lambda i: (0, 0))

    out = pl.pallas_call(
        nernn_kernel,
        out_shape=jax.ShapeDtypeStruct((B_pad, out_pad), bf16),
        grid=(n_steps,),
        in_specs=[
            tiled((TB, 3)),               # pre-offset word ids (int32)
            tiled((TB, 3 * nf)),          # features (bf16)
            resident((3 * vocab, half)),  # stacked (emb @ fce-block) LUT
            resident((1, half)),          # b_fce
            resident((3 * nf, 3 * fh)),   # block-diag fcf weight
            resident((1, 3 * fh)),        # tiled fcf bias
            resident((half, out_pad)),    # fc3 (embedding half), lane-padded
            resident((3 * fh, out_pad)),  # folded w_fh @ fc3 (feature half)
            resident((1, out_pad)),       # folded bias (pad = -1e30)
        ],
        out_specs=pl.BlockSpec((TB, out_pad), lambda i: (i, 0)),
        compiler_params=pltpu.CompilerParams(
            dimension_semantics=("parallel",)),
        cost_estimate=cost,
    )(words_off, feat, lut, params["b_fce"], w_bd, b_bd,
      w_fc3e, w_ff, b_tot)

    return out[:B, :out_size]


def nernn_reference(words, features, params):
    """Pure-JAX f32 reference mirroring the PyTorch forward."""
    B = words.shape[0]
    nf = params["num_features"]
    x0 = params["embeddings"][words.reshape(-1)].reshape(B, 3 * EMBEDDING_DIM)
    x0 = jax.nn.relu(x0 @ params["w_fce"] + params["b_fce"])
    flat = features.reshape(B, -1).astype(jnp.float32)
    fs = [flat[:, i * nf:(i + 1) * nf] for i in range(3)]
    xs = [jax.nn.relu(f @ params["w_fcf"] + params["b_fcf"]) for f in fs]
    xf = jnp.concatenate(xs, axis=1) @ params["w_fh"] + params["b_fh"]
    x = jnp.concatenate([x0, xf], axis=1) @ params["w_fc3"] + params["b_fc3"]
    return jax.nn.log_softmax(x, axis=1)


if __name__ == "__main__":
    B = 8
    VOCAB_SIZE = 32
    NUM_FEATURES = 8
    OUTPUT_SIZE = 9

    key = jax.random.PRNGKey(0)
    kp, kw, kf = jax.random.split(key, 3)

    params = init_params(kp, VOCAB_SIZE, NUM_FEATURES, OUTPUT_SIZE)

    # words: (B, 3) token ids for (prev, current, next); features: (B, 3, num_features)
    words = jax.random.randint(kw, (B, 3), 0, VOCAB_SIZE, dtype=jnp.int32)
    features = jax.random.randint(kf, (B, 3, NUM_FEATURES), 0, 2, dtype=jnp.int32)

    out = nernn_forward(words, features, params)
    out = jax.block_until_ready(out)

    ref = nernn_reference(words, features, params)
    assert out.shape == (B, OUTPUT_SIZE)
    # bf16 inputs/weights/output (f32 accumulation) => relaxed tolerance vs f32 ref.
    assert jnp.allclose(out.astype(jnp.float32), ref, atol=5e-2, rtol=5e-2)

    print("KERNEL_OK")
</pallas_src>

<mosaic_0001>
module attributes {stable_mosaic.version = 11 : i64} {
  func.func @nernn_kernel(%arg0: i32, %arg1: memref<8x3xi32, #tpu.memory_space<vmem>>, %arg2: memref<8x24xbf16, #tpu.memory_space<vmem>>, %arg3: memref<96x50xbf16, #tpu.memory_space<vmem>>, %arg4: memref<1x50xf32, #tpu.memory_space<vmem>>, %arg5: memref<24x300xbf16, #tpu.memory_space<vmem>>, %arg6: memref<1x300xf32, #tpu.memory_space<vmem>>, %arg7: memref<50x128xbf16, #tpu.memory_space<vmem>>, %arg8: memref<300x128xbf16, #tpu.memory_space<vmem>>, %arg9: memref<1x128xf32, #tpu.memory_space<vmem>>, %arg10: memref<8x128xbf16, #tpu.memory_space<vmem>>) attributes {dimension_semantics = [#tpu.dimension_semantics<parallel>], iteration_bounds = array<i64: 2>, scalar_prefetch = 0 : i64, scratch_operands = 0 : i64, tpu.core_type = #tpu.core_type<tc>, window_params = [{transform_indices = @transform_0, window_bounds = array<i64: 8, 3>}, {transform_indices = @transform_1, window_bounds = array<i64: 8, 24>}, {pipeline_mode = #tpu.pipeline_mode<synchronous>, transform_indices = @transform_2, window_bounds = array<i64: 96, 50>}, {pipeline_mode = #tpu.pipeline_mode<synchronous>, transform_indices = @transform_3, window_bounds = array<i64: 1, 50>}, {pipeline_mode = #tpu.pipeline_mode<synchronous>, transform_indices = @transform_4, window_bounds = array<i64: 24, 300>}, {pipeline_mode = #tpu.pipeline_mode<synchronous>, transform_indices = @transform_5, window_bounds = array<i64: 1, 300>}, {pipeline_mode = #tpu.pipeline_mode<synchronous>, transform_indices = @transform_6, window_bounds = array<i64: 50, 128>}, {pipeline_mode = #tpu.pipeline_mode<synchronous>, transform_indices = @transform_7, window_bounds = array<i64: 300, 128>}, {pipeline_mode = #tpu.pipeline_mode<synchronous>, transform_indices = @transform_8, window_bounds = array<i64: 1, 128>}, {transform_indices = @transform_9, window_bounds = array<i64: 8, 128>}]} {
    %c0 = arith.constant 0 : index
    %c0_0 = arith.constant 0 : index
    %0 = vector.load %arg1[%c0, %c0_0] : memref<8x3xi32, #tpu.memory_space<vmem>>, vector<8x3xi32>
    %1 = tpu.iota {dimensions = array<i32: 1>} : vector<8x96xi32>
    %2 = vector.extract_strided_slice %0 {offsets = [0, 0], sizes = [8, 1], strides = [1, 1]} : vector<8x3xi32> to vector<8x1xi32>
    %3 = vector.broadcast %2 : vector<8x1xi32> to vector<8x96xi32>
    %4 = arith.cmpi eq, %1, %3 : vector<8x96xi32>
    %5 = arith.extui %4 : vector<8x96xi1> to vector<8x96xi32>
    %6 = arith.sitofp %5 : vector<8x96xi32> to vector<8x96xf32>
    %7 = arith.truncf %6 : vector<8x96xf32> to vector<8x96xbf16>
    %8 = vector.extract_strided_slice %0 {offsets = [0, 1], sizes = [8, 1], strides = [1, 1]} : vector<8x3xi32> to vector<8x1xi32>
    %9 = vector.broadcast %8 : vector<8x1xi32> to vector<8x96xi32>
    %10 = arith.cmpi eq, %1, %9 : vector<8x96xi32>
    %11 = arith.extui %10 : vector<8x96xi1> to vector<8x96xi32>
    %12 = arith.sitofp %11 : vector<8x96xi32> to vector<8x96xf32>
    %13 = arith.truncf %12 : vector<8x96xf32> to vector<8x96xbf16>
    %14 = arith.addf %7, %13 : vector<8x96xbf16>
    %15 = vector.extract_strided_slice %0 {offsets = [0, 2], sizes = [8, 1], strides = [1, 1]} : vector<8x3xi32> to vector<8x1xi32>
    %16 = vector.broadcast %15 : vector<8x1xi32> to vector<8x96xi32>
    %17 = arith.cmpi eq, %1, %16 : vector<8x96xi32>
    %18 = arith.extui %17 : vector<8x96xi1> to vector<8x96xi32>
    %19 = arith.sitofp %18 : vector<8x96xi32> to vector<8x96xf32>
    %20 = arith.truncf %19 : vector<8x96xf32> to vector<8x96xbf16>
    %21 = arith.addf %14, %20 : vector<8x96xbf16>
    %c0_1 = arith.constant 0 : index
    %c0_2 = arith.constant 0 : index
    %22 = vector.load %arg3[%c0_1, %c0_2] : memref<96x50xbf16, #tpu.memory_space<vmem>>, vector<96x50xbf16>
    %cst = arith.constant dense<0.000000e+00> : vector<8x50xf32>
    %23 = tpu.matmul %21, %22, %cst {dimension_numbers = #tpu.dot_dimension_numbers<[1], [0], [0], [1], [0, 0, 1, 1], [], []>} : vector<8x96xbf16>, vector<96x50xbf16>, vector<8x50xf32> -> vector<8x50xf32>
    %c0_3 = arith.constant 0 : index
    %c0_4 = arith.constant 0 : index
    %24 = vector.load %arg4[%c0_3, %c0_4] : memref<1x50xf32, #tpu.memory_space<vmem>>, vector<1x50xf32>
    %25 = vector.broadcast %24 : vector<1x50xf32> to vector<8x50xf32>
    %26 = arith.addf %23, %25 : vector<8x50xf32>
    %cst_5 = arith.constant 0.000000e+00 : f32
    %27 = vector.broadcast %cst_5 : f32 to vector<8x50xf32>
    %28 = arith.maximumf %26, %27 : vector<8x50xf32>
    %c0_6 = arith.constant 0 : index
    %c0_7 = arith.constant 0 : index
    %29 = vector.load %arg2[%c0_6, %c0_7] : memref<8x24xbf16, #tpu.memory_space<vmem>>, vector<8x24xbf16>
    %c0_8 = arith.constant 0 : index
    %c0_9 = arith.constant 0 : index
    %30 = vector.load %arg5[%c0_8, %c0_9] : memref<24x300xbf16, #tpu.memory_space<vmem>>, vector<24x300xbf16>
    %cst_10 = arith.constant dense<0.000000e+00> : vector<8x300xf32>
    %31 = tpu.matmul %29, %30, %cst_10 {dimension_numbers = #tpu.dot_dimension_numbers<[1], [0], [0], [1], [0, 0, 1, 1], [], []>} : vector<8x24xbf16>, vector<24x300xbf16>, vector<8x300xf32> -> vector<8x300xf32>
    %c0_11 = arith.constant 0 : index
    %c0_12 = arith.constant 0 : index
    %32 = vector.load %arg6[%c0_11, %c0_12] : memref<1x300xf32, #tpu.memory_space<vmem>>, vector<1x300xf32>
    %33 = vector.broadcast %32 : vector<1x300xf32> to vector<8x300xf32>
    %34 = arith.addf %31, %33 : vector<8x300xf32>
    %cst_13 = arith.constant 0.000000e+00 : f32
    %35 = vector.broadcast %cst_13 : f32 to vector<8x300xf32>
    %36 = arith.maximumf %34, %35 : vector<8x300xf32>
    %37 = arith.truncf %36 : vector<8x300xf32> to vector<8x300xbf16>
    %38 = arith.truncf %28 : vector<8x50xf32> to vector<8x50xbf16>
    %c0_14 = arith.constant 0 : index
    %c0_15 = arith.constant 0 : index
    %39 = vector.load %arg7[%c0_14, %c0_15] : memref<50x128xbf16, #tpu.memory_space<vmem>>, vector<50x128xbf16>
    %cst_16 = arith.constant dense<0.000000e+00> : vector<8x128xf32>
    %40 = tpu.matmul %38, %39, %cst_16 {dimension_numbers = #tpu.dot_dimension_numbers<[1], [0], [0], [1], [0, 0, 1, 1], [], []>} : vector<8x50xbf16>, vector<50x128xbf16>, vector<8x128xf32> -> vector<8x128xf32>
    %c0_17 = arith.constant 0 : index
    %c0_18 = arith.constant 0 : index
    %41 = vector.load %arg8[%c0_17, %c0_18] : memref<300x128xbf16, #tpu.memory_space<vmem>>, vector<300x128xbf16>
    %cst_19 = arith.constant dense<0.000000e+00> : vector<8x128xf32>
    %42 = tpu.matmul %37, %41, %cst_19 {dimension_numbers = #tpu.dot_dimension_numbers<[1], [0], [0], [1], [0, 0, 1, 1], [], []>} : vector<8x300xbf16>, vector<300x128xbf16>, vector<8x128xf32> -> vector<8x128xf32>
    %43 = arith.addf %40, %42 : vector<8x128xf32>
    %c0_20 = arith.constant 0 : index
    %c0_21 = arith.constant 0 : index
    %44 = vector.load %arg9[%c0_20, %c0_21] : memref<1x128xf32, #tpu.memory_space<vmem>>, vector<1x128xf32>
    %45 = vector.broadcast %44 : vector<1x128xf32> to vector<8x128xf32>
    %46 = arith.addf %43, %45 : vector<8x128xf32>
    %cst_22 = arith.constant dense<0xFF800000> : vector<8xf32>
    %47 = vector.multi_reduction <maximumf>, %46, %cst_22 [1] : vector<8x128xf32> to vector<8xf32>
    %48 = vector.shape_cast %47 : vector<8xf32> to vector<8x1xf32>
    %49 = vector.broadcast %48 : vector<8x1xf32> to vector<8x128xf32>
    %50 = arith.subf %46, %49 : vector<8x128xf32>
    %51 = math.exp %50 : vector<8x128xf32>
    %cst_23 = arith.constant dense<0.000000e+00> : vector<8xf32>
    %52 = vector.multi_reduction <add>, %51, %cst_23 [1] : vector<8x128xf32> to vector<8xf32>
    %53 = vector.shape_cast %52 : vector<8xf32> to vector<8x1xf32>
    %54 = math.log %53 : vector<8x1xf32>
    %55 = vector.broadcast %54 : vector<8x1xf32> to vector<8x128xf32>
    %56 = arith.subf %50, %55 : vector<8x128xf32>
    %57 = arith.truncf %56 : vector<8x128xf32> to vector<8x128xbf16>
    %c0_24 = arith.constant 0 : index
    %c0_25 = arith.constant 0 : index
    %58 = vector.load %arg10[%c0_24, %c0_25] : memref<8x128xbf16, #tpu.memory_space<vmem>>, vector<8x128xbf16>
    tpu.vector_store %arg10[%c0_24, %c0_25], %57 {strides = array<i32>} : memref<8x128xbf16, #tpu.memory_space<vmem>>, vector<8x128xbf16>,
    return
  }
  func.func @transform_0(%arg0: i32) -> (i32, i32) {
    %c0_i32 = arith.constant 0 : i32
    %c0_i32_0 = arith.constant 0 : i32
    return %arg0, %c0_i32 : i32, i32
  }
  func.func @transform_1(%arg0: i32) -> (i32, i32) {
    %c0_i32 = arith.constant 0 : i32
    %c0_i32_0 = arith.constant 0 : i32
    return %arg0, %c0_i32 : i32, i32
  }
  func.func @transform_2(%arg0: i32) -> (i32, i32) {
    %c0_i32 = arith.constant 0 : i32
    %c0_i32_0 = arith.constant 0 : i32
    %c0_i32_1 = arith.constant 0 : i32
    return %c0_i32, %c0_i32_0 : i32, i32
  }
  func.func @transform_3(%arg0: i32) -> (i32, i32) {
    %c0_i32 = arith.constant 0 : i32
    %c0_i32_0 = arith.constant 0 : i32
    %c0_i32_1 = arith.constant 0 : i32
    return %c0_i32, %c0_i32_0 : i32, i32
  }
  func.func @transform_4(%arg0: i32) -> (i32, i32) {
    %c0_i32 = arith.constant 0 : i32
    %c0_i32_0 = arith.constant 0 : i32
    %c0_i32_1 = arith.constant 0 : i32
    return %c0_i32, %c0_i32_0 : i32, i32
  }
  func.func @transform_5(%arg0: i32) -> (i32, i32) {
    %c0_i32 = arith.constant 0 : i32
    %c0_i32_0 = arith.constant 0 : i32
    %c0_i32_1 = arith.constant 0 : i32
    return %c0_i32, %c0_i32_0 : i32, i32
  }
  func.func @transform_6(%arg0: i32) -> (i32, i32) {
    %c0_i32 = arith.constant 0 : i32
    %c0_i32_0 = arith.constant 0 : i32
    %c0_i32_1 = arith.constant 0 : i32
    return %c0_i32, %c0_i32_0 : i32, i32
  }
  func.func @transform_7(%arg0: i32) -> (i32, i32) {
    %c0_i32 = arith.constant 0 : i32
    %c0_i32_0 = arith.constant 0 : i32
    %c0_i32_1 = arith.constant 0 : i32
    return %c0_i32, %c0_i32_0 : i32, i32
  }
  func.func @transform_8(%arg0: i32) -> (i32, i32) {
    %c0_i32 = arith.constant 0 : i32
    %c0_i32_0 = arith.constant 0 : i32
    %c0_i32_1 = arith.constant 0 : i32
    return %c0_i32, %c0_i32_0 : i32, i32
  }
  func.func @transform_9(%arg0: i32) -> (i32, i32) {
    %c0_i32 = arith.constant 0 : i32
    %c0_i32_0 = arith.constant 0 : i32
    return %arg0, %c0_i32 : i32, i32
  }
}

</mosaic_0001>

<bundles_post_ra>
// kernel: tpu_custom_call.1
= control target key start
LH: loop header
LB: loop body
LE: loop exit
PB: predicated region body
PF: predicated region fallthrough
CT: control target
= control target key end

     0   :  { %14 = vsyncpa [#allocation3], 0  ;;  %s1694_s0 = inlined_call_operand.vmem [shape: s32[16,3], index: 0, kind: input, shape index: {}]   ;;  %s1695_s1 = inlined_call_operand.vmem [shape: bf16[16,24], index: 1, kind: input, shape index: {}]   ;;  %s1696_s2 = inlined_call_operand.vmem [shape: bf16[96,50], index: 2, kind: input, shape index: {}]   ;;  %s1697_s3 = inlined_call_operand.vmem [shape: f32[1,50], index: 3, kind: input, shape index: {}]   ;;  %s1698_s4 = inlined_call_operand.vmem [shape: bf16[24,300], index: 4, kind: input, shape index: {}]   ;;  %s1699_s5 = inlined_call_operand.vmem [shape: f32[1,300], index: 5, kind: input, shape index: {}]   ;;  %s1700_s6 = inlined_call_operand.vmem [shape: bf16[50,128], index: 6, kind: input, shape index: {}]   ;;  %s1701_s7 = inlined_call_operand.hbm [shape: bf16[300,128], index: 7, kind: input, shape index: {}]   ;;  %s1702_s8 = inlined_call_operand.vmem [shape: f32[1,128], index: 8, kind: input, shape index: {}]   ;;  %s1703_s9 = inlined_call_operand.hbm [shape: bf16[16,128], index: 9, kind: output, shape index: {}]  }
   0x1   :  { %15 = vsyncpa [#allocation4], 0 }
   0x2   :  { %17 = vsyncpa [#allocation4 + $0x1], 0  ;;  %s1471_s30 = smov 0   ;;  %s1473_s10 = smov 0  }
   0x3   :  { %s1475_s11 = smov 0   ;;  %s1477_s12 = smov 0  }
   0x4 LB: > { %s1492_s13 = sadd.s32 4294967295, %s1410_s12   ;;  %s1069_s14 = sadd.s32 4294967294, %s1410_s12   ;;  %s1410_s12 = sphi %s1477_s12, %s1719_s12   ;;  %s1406_s11 = sphi %s1475_s11, %s1718_s11   ;;  %s1402_s10 = sphi %s1473_s10, %s1717_s10   ;;  %s1398_s30 = sphi %s1471_s30, %s1716_s30  }
   0x5   : > { %s1496_s15 = sadd.s32 1, %s1410_s12   ;;  %s229_s16 = sadd.s32 1, %s1406_s11 }
   0x6   : > { %s226_s17 = ssub.s32 %s1410_s12, %s1496_s15  ;;  %p239_p0 = scmp.ne.s32.totalorder %s1406_s11, %s1402_s10 }
   0x7   : > { %p227_p1 = scmp.eq.s32.totalorder %s226_s17, 0  ;;  %p240_p2 = scmp.eq.s32.totalorder %s1492_s13, 1 }
   0x8   : > { %p245_p3 = scmp.ne.s32.totalorder %s1402_s10, %s1398_s30  ;;  %p246_p4 = scmp.eq.s32.totalorder %s1069_s14, 1 }
   0x9   : > { %s1507_s18 = scalar_select %p227_p1, %s1406_s11, %s229_s16  }
   0xa   : > { %p1509_p5 = por %p240_p2, %p239_p0  ;;  %p1513_p6 = por %p246_p4, %p245_p3 }
   0xb   : > { %p1070_p7 = scmp.ge.s32.totalorder %s1410_s12, 1  ;;  %p253_p8 = scmp.lt.s32.totalorder %s1410_s12, 3 }
   0xc   : > { %s1707_s19 = scalar_select %p1509_p5, 1, 0 }
   0xd   : > { %s1708_s20 = scalar_select %p1513_p6, 1, 0 }
   0xe   : > { %p1704_p9 = scmp.eq.s32.totalorder %s1492_s13, 0  ;;  %p1520_p10 = pnand %p1070_p7, %p253_p8 }
   0xf   : > { %s1412_s22 = smov [#allocation2]   ;;  %s1316_s27 = scalar_lea.hbm %s1701_s7, 2432 }
  0x10   : > { %s1709_s21 = scalar_select %p1520_p10, 1, 0 }
  0x11   : > { %s280_s23 = sshll.u32 %s1412_s22, 4  ;;  %p1221_p11 = pneg %p1520_p10  ;;  %s281_s23 = int_to_ptr.vmem [resolvable:$true] %s280_s23 }
  0x12   : > { %p1317_p13 = scmp.ne.s32.totalorder %s1701_s7, %s1316_s27  ;;  %p1323_p3 = scmp.lt.u32.totalorder %s1316_s27, %s1701_s7 }
  0x13   : > { %p1528_p12 = pnand %p1704_p9, %p1221_p11 }
  0x15   : > { %p1318_p0 = pneg %p1528_p12 }
  0x17   : > { %p1319_p1 = pnand %p1318_p0, %p1317_p13 }
  0x19   : > { %p1320_p2 = pneg %p1319_p1 }
  0x1b   : > { %p1325_p4 = pnand %p1323_p3, %p1320_p2 }
  0x1d   : > { %1328 = shalt.err (!%p1325_p4)
}
  0x1e   : > { %s1329_s17 = scalar_lea.vmem %s281_s23, 2432  ;;  %p1337_p9 = scmp.lt.s32.totalorder %s281_s23, %s281_s23 }
  0x1f   : > { %p1330_p7 = scmp.ne.s32.totalorder %s281_s23, %s1329_s17  ;;  %p1338_p6 = scmp.lt.s32.totalorder %s1329_s17, %s1329_s17 }
  0x21   : > { %p1332_p8 = pnand %p1330_p7, %p1318_p0  ;;  %p1339_p5 = por %p1338_p6, %p1337_p9 }
  0x23   : > { %p1333_p11 = pneg %p1332_p8 }
  0x25   : > { %p1340_p10 = pnand %p1339_p5, %p1333_p11 }
  0x27   : > { %1343 = shalt.err (!%p1340_p10)
}
  0x28   : > { %s1413_s22 = smov 64   ;;  %s1414_s25 = smov 4  }
  0x29   : > { %1224 = dma.hbm_to_vmem [thread:$0]  (!%p1528_p12), %s1701_s7, 2432, %s281_s23, [#allocation3], %s1413_s22, %s1413_s22, %s1414_s25  }
  0x2a   : > { %p1711_p13 = scmp.ne.s32.totalorder %s1709_s21, 0 }
  0x2b   : > { %p1712_p1 = scmp.eq.s32.totalorder (!%p1711_p13), %s1492_s13, 0 }
  0x2c   : > { %313 = sbr.rel (%p1711_p13) target bundleno = 964 (0x3c4), region = 56 }
  0x33   : > { %1389 = dma.done.wait (%p1712_p1), [#allocation3], 2432   ;;  %p1713_p0 = pmov %p1712_p1 }
  0x34   : > { %p352_p5 = scmp.lt.s32.totalorder %s1492_s13, 1  ;;  %v1415_v0 = vmov 0   ;;  %v1416_v1 = vmov 2   ;;  %v1417_v2 = vmov 0.0   ;;  %vm1418_vm0 = vmmov 0   ;;  %v492_v6 = vld [vmem:[%s1698_s4 + $0x18] sm:$0xff] }
  0x35   : > { %1391 = vsyncadd (%p1713_p0), [#allocation3], 4294964864  ;;  %1272 = vset.pattern.permute.xlu0 %v1415_v0  ;;  %1274 = vset.pattern.permute.xlu1 %v1416_v1  ;;  %v1276_v4 = vld [vmem:[%s1698_s4 + $0x4] ss:$12 sps:$4 sm:$0xff]   ;;  %v1278_v5 = vld [vmem:[%s1698_s4] ss:$12 sps:$4 sm:$0xff]   ;;  %v1093_v7 = vcombine.high %v492_v6, %v492_v6  ;;  %v1092_v8 = vcombine.low %v492_v6, %v492_v6  ;;  %v362_v37 = vlaneseq }
  0x36   : > { %s353_s24 = scalar_select %p352_p5, %s1492_s13, 1  ;;  %581 = vmatprep.mubr.bf16.mxu1 %v1415_v0  ;;  %1169 = vmatprep.subr.bf16.mxu0 %v1417_v2  ;;  %vm539_vm1 = vcmask 1043456   ;;  %v1283_v9 = vld [vmem:[%s1696_s2] sm:$0xff]   ;;  %v1419_v10 = vmov 1   ;;  %vm535_vm2 = vcmask 195584   ;;  %v1284_v13 = vld [vmem:[%s1696_s2 + $0x8] sm:$0xff]  }
  0x37   : > { %1181 = vmatprep.mubr.msk.bf16.mxu0 %vm1418_vm0, %v1417_v2  ;;  %549 = vmatprep.subr.bf16.mxu1 %v1276_v4  ;;  %v541_v11 = vsel %vm539_vm1, %v1092_v8, 0  ;;  %v1281_v14 = vld [vmem:[%s1698_s4 + $0x8] ss:$12 sps:$4 sm:$0xff]   ;;  %v1282_v15 = vld [vmem:[%s1698_s4 + $0x20] ss:$0 sps:$4 sm:$0xff]   ;;  %v1286_v18 = vld [vmem:[%s1696_s2 + $0x18] sm:$0xff]  }
  0x38   : > { %s1076_s21 = sshll.u32 %s353_s24, 3  ;;  %s1077_s14 = sshll.u32 %s353_s24, 2  ;;  %550 = vmatpush1.bf16.msra.mxu1 %v1278_v5  ;;  %1170 = vmatpush3.bf16.msra.mxu0 %v1283_v9  ;;  %v1285_v16 = vld [vmem:[%s1696_s2 + $0x10] sm:$0xff]   ;;  %v547_v17 = vsel %vm539_vm1, %v1282_v15, 0  ;;  %v1289_v19 = vld [vmem:[#allocation2 + $0x40] sm:$0xff]   ;;  %v1291_v21 = vld [vmem:[#allocation2 + $0x48] sm:$0xff]  }
  0x39   : > { %s355_s29 = scalar_lea.vmem %s1694_s0, %s1076_s21  ;;  %s359_s23 = scalar_lea.vmem %s1695_s1, %s1077_s14  ;;  %1095 = vmatprep.subr.msk.bf16.mxu1 %vm539_vm1, %v1093_v7  ;;  %1171 = vmatprep.subr.bf16.mxu0 %v1417_v2  ;;  %v1290_v20 = vld [vmem:[#allocation2] sm:$0xff]   ;;  %v1292_v23 = vld [vmem:[#allocation2 + $0x8] sm:$0xff]   ;;  %v1293_v24 = vld [vmem:[#allocation2 + $0x50] sm:$0xff]   ;;  %v363_v38 = vand.u32 127, %v362_v37  ;;  %vm442_vm6 = vcmask 785408   ;;  %vm799_vm7 = vcmask 1045504  }
  0x3a   : > { %v361_v3 = vld [vmem:[%s355_s29] sm:$0xff]  ;;  %v1288_v25 = vld [vmem:[%s1696_s2 + $0x28] sm:$0xff]   ;;  %v1294_v26 = vld [vmem:[#allocation2 + $0x10] sm:$0xff]   ;;  %v497_v54 = vshrl.u32 %v362_v37, 7  ;;  %vm795_vm8 = vcmask 359424   ;;  %vm908_vm9 = vcmask 1040384  }
  0x3b   : > { %365 = vperm.xlu0 %1272, %v361_v3   ;;  %380 = vperm.xlu1 %1274, %v361_v3   ;;  %v487_v12 = vld [vmem:[%s359_s23] sm:$0xf]  ;;  %v1295_v27 = vld [vmem:[#allocation2 + $0x58] sm:$0xff]   ;;  %v1299_v31 = vld [vmem:[#allocation2 + $0x68] sm:$0xff]   ;;  %vm904_vm10 = vcmask 408576   ;;  %s349_s25 = sand.u32 1, %s1402_s10  }
  0x3c   : > { %552 = vmatpush1.bf16.msra.mxu1 %v541_v11  ;;  %1172 = vmatpush3.bf16.msra.mxu0 %v1284_v13  ;;  %v1287_v22 = vld [vmem:[%s1696_s2 + $0x20] sm:$0xff]   ;;  %v1296_v28 = vld [vmem:[#allocation2 + $0x18] sm:$0xff]   ;;  %v1300_v32 = vld [vmem:[#allocation2 + $0x28] sm:$0xff]   ;;  %v498_v55 = vsub.s32 0, %v497_v54  ;;  %v502_v57 = vsub.s32 1, %v497_v54  ;;  %v506_v63 = vsub.s32 2, %v497_v54 }
  0x3d   : > { %1185 = vmatprep.subr.bf16.mxu1 %v1417_v2  ;;  %1173 = vmatprep.subr.bf16.mxu0 %v1417_v2  ;;  %v1297_v29 = vld [vmem:[#allocation2 + $0x60] sm:$0xff]   ;;  %v1301_v33 = vld [vmem:[#allocation2 + $0x70] sm:$0xff]   ;;  %v1304_v35 = vld [vmem:[#allocation2 + $0x78] sm:$0xff]   ;;  %s1075_s26 = sshll.u32 %s349_s25, 2  ;;  %s1125_s28 = sshll.u32 %s1492_s13, 6 }
  0x3e   : > { %v1298_v30 = vld [vmem:[#allocation2 + $0x20] sm:$0xff]   ;;  %v1302_v34 = vld [vmem:[#allocation2 + $0x30] sm:$0xff]   ;;  %v1305_v36 = vld [vmem:[#allocation2 + $0x38] sm:$0xff]   ;;  %s351_s21 = scalar_lea.vmem [#allocation5], %s1075_s26  ;;  %s1652_s29 = scalar_lea.hbm %s1703_s9, %s1125_s28 }
  0x3f   : > { %1273 = vset.pattern.permute.xlu0 %v1419_v10  ;;  %1096 = vmatmul.mubr.msk.bf16.vlgmr.msra.gmra.mrb[0].mxu1 %vm535_vm2, %v487_v12  ;;  %v1303_v49 = vld [vmem:[#allocation2 + $0x80] sm:$0xff]   ;;  %v1306_v51 = vld [vmem:[#allocation2 + $0x88] sm:$0xff]   ;;  %v1307_v52 = vld [vmem:[#allocation2 + $0x90] sm:$0x3f]   ;;  %s986_s24 = sshll.u32 %s351_s21, 4  ;;  %s973_s16 = scalar_lea.sflag [#allocation4], %s349_s25  ;;  %s1654_s24 = int_to_ptr.vmem [resolvable:$true] %s986_s24 }
  0x40   : > { %372 = vperm.xlu0 %1273, %v361_v3   ;;  %1186 = vmatpush3.bf16.msra.mxu1 %v1281_v14  ;;  %v801_v53 = vsel %vm799_vm7, %v1307_v52, 0  ;;  %v494_v56 = vld [vmem:[%s1699_s5] sm:$0x7]  ;;  %s1344_s17 = scalar_lea.vmem %s1654_s24, 64  ;;  %p1714_p9 = scmp.ne.s32.totalorder %s1707_s19, 0 }
  0x41   : > { %1189 = vmatprep.mubr.msk.bf16.mxu1 %vm1418_vm0, %v1417_v2  ;;  %1187 = vmatprep.subr.bf16.mxu1 %v1417_v2  ;;  %v499_v58 = vrot.slane %v494_v56, %v498_v55  ;;  %v503_v59 = vrot.slane %v494_v56, %v502_v57  ;;  %v507_v7 = vrot.slane %v494_v56, %v506_v63  ;;  %v1308_v15 = vld [vmem:[%s1700_s6] sm:$0xff]   ;;  %p1345_p6 = scmp.ne.s32.totalorder %s1654_s24, %s1344_s17  ;;  %s1420_s13 = smov [#allocation5]  }
  0x42   : > { %1174 = vmatpush3.bf16.msra.mxu0 %v1285_v16  ;;  %s1348_s14 = sshll.u32 %s1420_s13, 4  ;;  %s1349_s14 = int_to_ptr.vmem [resolvable:$false] %s1348_s14 }
  0x43   : > { %1175 = vmatprep.subr.bf16.mxu0 %v1417_v2  ;;  %p1346_p10 = pnand %p1345_p6, %p1714_p9  ;;  %s1350_s22 = scalar_lea.vmem %s1349_s14, 128 }
  0x44   : > { %1275 = vset.pattern.permute.xlu0 %v1416_v1  ;;  %1188 = vmatpush3.bf16.msra.mxu1 %v547_v17  ;;  %v1309_v17 = vld [vmem:[%s1700_s6 + $0x8] sm:$0xff]   ;;  %p1351_p2 = scmp.lt.s32.totalorder %s1654_s24, %s1349_s14  ;;  %p1352_p3 = scmp.lt.s32.totalorder %s1350_s22, %s1344_s17 }
  0x45   : > { %1138 = vmatprep.subr.bf16.mxu1 %v1289_v19  ;;  %v1311_v19 = vld [vmem:[%s1700_s6 + $0x18] ss:$0 sps:$4 sm:$0x11]   ;;  %p1347_p12 = pneg %p1346_p10 }
  0x46   : > { %1176 = vmatpush3.bf16.msra.mxu0 %v1286_v18  ;;  %v1310_v18 = vld [vmem:[%s1700_s6 + $0x10] sm:$0xff]   ;;  %p1353_p4 = por %p1352_p3, %p1351_p2 }
  0x47   : > { %1190 = vmatmul.mubr.msk.bf16.vlgmr.msra.gmra.mrb[4].mxu1 %vm535_vm2, %v487_v12  ;;  %1177 = vmatprep.subr.bf16.mxu0 %v1417_v2 }
  0x48   : > { %1139 = vmatpush3.bf16.msra.mxu1 %v1290_v20  ;;  %v910_v20 = vsel %vm908_vm9, %v1311_v19, 0  ;;  %p1354_p7 = pnand %p1353_p4, %p1347_p12 }
  0x49   : > { %1140 = vmatprep.subr.bf16.mxu1 %v1291_v21  ;;  %v1081_v21 = vld [vmem:[%s1697_s3] ss:$0 sm:$0xff] }
  0x4a   : > { %1178 = vmatpush3.bf16.msra.mxu0 %v1287_v22 }
  0x4b   : > { %1179 = vmatprep.subr.bf16.mxu0 %v1417_v2 }
  0x4c   : > { %1141 = vmatpush3.bf16.msra.mxu1 %v1292_v23 }
  0x4d   : > { %1142 = vmatprep.subr.bf16.mxu1 %v1293_v24 }
  0x4e   : > { %1180 = vmatpush3.bf16.msra.mxu0 %v1288_v25 }
  0x4f   : > { %1193 = vmatprep.subr.bf16.mxu0 %v1417_v2 }
  0x50   : > { %1143 = vmatpush3.bf16.msra.mxu1 %v1294_v26 }
  0x51   : > { %1144 = vmatprep.subr.bf16.mxu1 %v1295_v27 }
  0x54   : > { %1145 = vmatpush3.bf16.msra.mxu1 %v1296_v28 }
  0x55   : > { %1146 = vmatprep.subr.bf16.mxu1 %v1297_v29 }
  0x58   : > { %1147 = vmatpush3.bf16.msra.mxu1 %v1298_v30 }
  0x59   : > { %1148 = vmatprep.subr.bf16.mxu1 %v1299_v31 }
  0x5c   : > { %1149 = vmatpush3.bf16.msra.mxu1 %v1300_v32 }
  0x5d   : > { %1150 = vmatprep.subr.bf16.mxu1 %v1301_v33 }
  0x60   : > { %1151 = vmatpush3.bf16.msra.mxu1 %v1302_v34 }
  0x61   : > { %1152 = vmatprep.subr.bf16.mxu1 %v1304_v35 }
  0x64   : > { %1153 = vmatpush3.bf16.msra.mxu1 %v1305_v36 }
  0xba   : > { %v366_v39 = vpop.permute.xlu0 %365  ;;  %v381_v40 = vpop.permute.xlu1 %380 }
  0xbb   : > { %vm367_vm3 = vcmp.eq.s32.totalorder %v363_v38, %v366_v39  ;;  %vm382_vm4 = vcmp.eq.s32.totalorder %v363_v38, %v381_v40  ;;  %v1123_v39 = vld [vmem:[%s1702_s8] ss:$0 sm:$0xff] }
  0xbc   : > { %v1078_v41 = vsel %vm367_vm3, 1.0, %v1417_v2  ;;  %v1080_v43 = vsel %vm382_vm4, 1.0, %v1417_v2 }
  0xbd   : > { %v370_v45 = vpack.c.bf16 %v1078_v41, %v1078_v41  ;;  %v385_v47 = vpack.c.bf16 %v1080_v43, %v1080_v43 }
  0xbf   : > { %v373_v42 = vpop.permute.xlu0 %372 }
  0xc0   : > { %vm374_vm5 = vcmp.eq.s32.totalorder %v363_v38, %v373_v42 }
  0xc1   : > { %v1079_v44 = vsel %vm374_vm5, 1.0, %v1417_v2 }
  0xc2   : > { %v377_v46 = vpack.c.bf16 %v1079_v44, %v1079_v44 }
  0xc4   : > { %v378_v48 = vadd.bf16 %v377_v46, %v370_v45 }
  0xc6   : > { %v386_v50 = vadd.bf16 %v385_v47, %v378_v48 }
  0xc8   : > { %1182 = vmatmul.mubr.msk.bf16.vlgmr.msra.gmra.mrb[0].mxu0 %vm442_vm6, %v386_v50 }
  0xc9   : > { %1194 = vmatpush3.bf16.msra.mxu0 %v1303_v49  ;;  %1199 = vmatprep.mubr.msk.bf16.mxu0 %vm1418_vm0, %v1417_v2 }
  0xca   : > { %1195 = vmatprep.subr.bf16.mxu0 %v1417_v2 }
  0xcd   : > { %1196 = vmatpush3.bf16.msra.mxu0 %v1306_v51 }
  0xce   : > { %1197 = vmatprep.subr.bf16.mxu0 %v1417_v2 }
  0xd1   : > { %1198 = vmatpush3.bf16.msra.mxu0 %v801_v53 }
  0xd2   : > { %1203 = vmatprep.subr.bf16.mxu0 %v1417_v2 }
 0x112   : > { %v583_v60 = vpop.f32.mrb[0].mxu1 }
 0x113   : > { %v584_v61 = vadd.f32 %v583_v60, %v499_v58  ;;  %v585_v62 = vpop.f32.mrb[1].mxu1 }
 0x114   : > { %v586_v0 = vadd.f32 %v585_v62, %v503_v59  ;;  %v587_v1 = vpop.f32.mrb[2].mxu1 }
 0x115   : > { %v630_v3 = vmax.f32 %v584_v61, 0.0  ;;  %v588_v4 = vpop.f32.mrb[3].mxu1 }
 0x116   : > { %v631_v5 = vmax.f32 %v586_v0, 0.0 }
 0x117   : > { %v633_v6 = vpack.c.bf16 %v630_v3, %v630_v3 }
 0x118   : > { %v634_v8 = vpack.c.bf16 %v631_v5, %v631_v5 }
 0x11a   : > { %v624_v9 = vpop.f32.mrb[4].mxu1  ;;  %835 = vmatprep.mubr.bf16.mxu1 %v634_v8 }
 0x11b   : > { %v625_v10 = vadd.f32 %v624_v9, %v507_v7  ;;  %836 = vmatmul.mubr.bf16.vlgmr.msra.gmra.mrb[8].mxu1 %v633_v6  ;;  %v1191_v11 = vpop.f32.mrb[5].mxu1 }
 0x11c   : > { %v627_v12 = vpop.f32.mrb[6].mxu1 }
 0x11d   : > { %v632_v13 = vmax.f32 %v625_v10, 0.0  ;;  %v1192_v14 = vpop.f32.mrb[7].mxu1 }
 0x11f   : > { %v635_v16 = vpack.c.bf16 %v632_v13, %v632_v13 }
 0x121   : > { %1200 = vmatmul.mubr.msk.bf16.vlgmr.msra.gmra.mrb[4].mxu0 %vm795_vm8, %v635_v16 }
 0x122   : > { %1204 = vmatpush3.bf16.msra.mxu0 %v1308_v15  ;;  %1211 = vmatprep.mubr.msk.bf16.mxu0 %vm1418_vm0, %v1417_v2 }
 0x123   : > { %1205 = vmatprep.subr.bf16.mxu0 %v1417_v2 }
 0x126   : > { %1206 = vmatpush3.bf16.msra.mxu0 %v1309_v17 }
 0x127   : > { %1207 = vmatprep.subr.bf16.mxu0 %v1417_v2 }
 0x12a   : > { %1208 = vmatpush3.bf16.msra.mxu0 %v1310_v18 }
 0x12b   : > { %1209 = vmatprep.subr.bf16.mxu0 %v1417_v2 }
 0x12e   : > { %1210 = vmatpush3.bf16.msra.mxu0 %v910_v20 }
 0x19b   : > { %v480_v22 = vpop.f32.mrb[0].mxu0 }
 0x19c   : > { %v481_v23 = vadd.f32 %v1081_v21, %v480_v22  ;;  %v1183_v24 = vpop.f32.mrb[1].mxu0 }
 0x19d   : > { %v483_v25 = vpop.f32.mrb[2].mxu0 }
 0x19e   : > { %v486_v26 = vmax.f32 %v481_v23, 0.0  ;;  %v1184_v27 = vpop.f32.mrb[3].mxu0 }
 0x1a0   : > { %v636_v28 = vpack.c.bf16 %v486_v26, %v486_v26 }
 0x1a2   : > { %1212 = vmatmul.mubr.msk.bf16.vlgmr.msra.gmra.mrb[8].mxu0 %vm904_vm10, %v636_v28 }
 0x1ee   : > { %v1154_v29 = vpop.f32.mrb[8].mxu1 }
 0x1ef   : > { %v1155_v30 = vpop.f32.mrb[9].mxu1 }
 0x1f0   : > { %v1156_v31 = vadd.f32 %v1155_v30, %v1154_v29  ;;  %v1157_v32 = vpop.f32.mrb[10].mxu1 }
 0x1f1   : > { %v1158_v2 = vpop.f32.mrb[11].mxu1 }
 0x1f4   : > { %v877_v33 = vpop.f32.mrb[4].mxu0 }
 0x1f5   : > { %v878_v34 = vadd.f32 %v1156_v31, %v877_v33  ;;  %v1201_v35 = vpop.f32.mrb[5].mxu0 }
 0x1f6   : > { %v880_v36 = vpop.f32.mrb[6].mxu0 }
 0x1f7   : > { %v1202_v37 = vpop.f32.mrb[7].mxu0 }
 0x275   : > { %v946_v38 = vpop.f32.mrb[8].mxu0 }
 0x276   : > { %v947_v40 = vadd.f32 %v946_v38, %v878_v34  ;;  %v1213_v41 = vpop.f32.mrb[9].mxu0 }
 0x277   : > { %v949_v42 = vpop.f32.mrb[10].mxu0 }
 0x278   : > { %v1214_v43 = vpop.f32.mrb[11].mxu0  ;;  %v959_v44 = vadd.f32 %v1123_v39, %v947_v40 }
 0x27a   : > { %960 = vmax.xlane.f32.xlu1 %v959_v44 }
 0x307   : > { %v961_v45 = vpop.xlane.xlu1 %960 }
 0x308   : > { %v962_v46 = vsub.f32 %v959_v44, %v961_v45 }
 0x30a   : > { %v963_v47 = vmul.f32 1.442695, %v962_v46 }
 0x30c   : > { %1312 = vpow2.f32 %v963_v47 }
 0x316   : > { %v1313_v48 = vpop.eup %1312 }
 0x317   : > { %965 = vadd.xlane.f32.xlu0 %v1313_v48 }
 0x3a4   : > { %v966_v49 = vpop.xlane.xlu0 %965 }
 0x3a5   : > { %1314 = vlog2.f32 %v966_v49 }
 0x3af   : > { %v1315_v50 = vpop.eup %1314 }
 0x3b0   : > { %v968_v51 = vmul.f32 0.6931472, %v1315_v50 }
 0x3b2   : > { %v969_v52 = vsub.f32 %v962_v46, %v968_v51 }
 0x3b4   : > { %v970_v53 = vpack.c.bf16 %v969_v52, %v969_v52 }
 0x3b6   : > { %971 = vst [vmem:[%s351_s21] sm:$0xf] %v970_v53 }
 0x3b7   : > { %1357 = shalt.err (!%p1354_p7)
}
 0x3b8   : > { %s1358_s25 = scalar_lea.hbm %s1652_s29, 64  ;;  %s1362_s21 = scalar_lea.hbm %s1703_s9, 128 }
 0x3b9   : > { %p1359_p8 = scmp.ne.s32.totalorder %s1652_s29, %s1358_s25  ;;  %p1363_p1 = scmp.lt.u32.totalorder %s1652_s29, %s1703_s9 }
 0x3ba   : > { %p1364_p0 = scmp.lt.u32.totalorder %s1362_s21, %s1358_s25  ;;  %p1366_p6 = scmp.lt.u32.totalorder %s1358_s25, %s1652_s29 }
 0x3bb   : > { %p1360_p11 = pnand %p1359_p8, %p1714_p9 }
 0x3bc   : > { %p1365_p5 = por %p1364_p0, %p1363_p1 }
 0x3bd   : > { %p1361_p13 = pneg %p1360_p11 }
 0x3be   : > { %p1367_p10 = por %p1366_p6, %p1365_p5 }
 0x3c0   : > { %p1368_p12 = pnand %p1367_p10, %p1361_p13 }
 0x3c2   : > { %1371 = shalt.err (!%p1368_p12)
}
 0x3c3   : > { %1219 = dma.vmem_to_hbm [thread:$0]  (%p1714_p9), %s1654_s24, 64, %s1652_s29, %s973_s16  }
 0x3c4 PF: > { %p1231_p2 = scmp.ge.s32.totalorder %s1410_s12, 2  ;;  %s998_s17 = sand.u32 1, %s1398_s30  }
 0x3c5   : > { %p1715_p3 = scmp.ne.s32.totalorder %s1708_s20, 0  ;;  %s999_s13 = scalar_lea.sflag [#allocation4], %s998_s17 }
 0x3c7   : > { %p1226_p4 = pnand %p1231_p2, %p1715_p3 }
 0x3c9   : > { %1393 = dma.done.wait (!%p1226_p4), %s999_s13, 64  }
 0x3ca   : > { %1395 = vsyncadd (!%p1226_p4), %s999_s13, 4294967232  ;;  %p20_p7 = scmp.ge.s32.totalorder %s1496_s15, 4   ;;  %s1716_s30 = smov %s1402_s10 }
 0x3cb   : > { %s1717_s10 = smov %s1406_s11  ;;  %s1718_s11 = smov %s1507_s18 }
 0x3cc   : > { %s1719_s12 = smov %s1496_s15  ;;  %22 = sbr.rel (!%p20_p7) target bundleno = 4 (0x4), region = 99 }
 0x3d3   :  { %1004 = vsyncpa [#allocation3], 1 }
 0x3d4   :  { %1006 = vsyncpa [#allocation3 + $0x1], 1 }
 0x3d5   :  { %1007 = vsyncpa [#allocation4], 1 }
 0x3d6   :  { %1009 = vsyncpa [#allocation4 + $0x1], 1 }

</bundles_post_ra>
